<compile_context>
chip_gen: v7x
topology: tpu7x:2x2x1
jax: 0.10.0
libtpu: 0.0.40
codegen_flags: <defaults>
</compile_context>

<pallas_src>
import functools

import jax
import jax.numpy as jnp
from jax import lax
from jax.experimental import pallas as pl
from jax.experimental.pallas import tpu as pltpu

_EPS_NORMALIZE = 1e-12   # F.normalize default eps
_EPS_BN = 1e-5           # nn.BatchNorm1d default eps


def _round_up(x, m):
    return ((x + m - 1) // m) * m


def _per_input_block_budget_bytes():
    """Generation-aware per-input VMEM block budget for the memory-bound pool.

    v5e: 16 MiB default scoped VMEM -> ~2 MiB blocks (2 inputs x 2 buffers = 8 MiB).
    v6e/v7x: 32 MiB scoped default and much higher HBM BW -> ~5 MiB blocks to
    amortize the ~0.35 us per-grid-step overhead (2 x 2 x 5 = 20 MiB, in budget).
    """
    try:
        kind = jax.devices()[0].device_kind.lower()
    except Exception:  # pragma: no cover - defensive
        kind = ""
    if ("v5 lite" in kind) or ("v5e" in kind) or ("v5lite" in kind):
        return 2 * 1024 * 1024
    return 5 * 1024 * 1024


def _pick_seq_tile(batch_rows, seq, dim, itemsize):
    budget = _per_input_block_budget_bytes()
    per_pos = max(1, batch_rows * dim * itemsize)      # bytes per seq position / input
    ts = max(8, (budget // per_pos) // 8 * 8)
    return int(min(ts, _round_up(seq, 8)))


# ---------------------------------------------------------------------------
# Shared head math: BatchNorm1d -> (dropout) -> fc1 -> ReLU -> fc2
# ---------------------------------------------------------------------------
def _head_math(avg, bn_gamma, bn_beta, w1, b1, w2, b2, compute_dtype):
    """`avg` is (B, D) f32 with exactly B valid rows."""
    inv_b = 1.0 / avg.shape[0]
    mean = jnp.sum(avg, axis=0, keepdims=True) * inv_b
    cen = avg - mean                                   # two-pass (centered) variance
    var = jnp.sum(cen * cen, axis=0, keepdims=True) * inv_b
    inv_std = lax.rsqrt(var + _EPS_BN)                 # EUP rsqrt
    bn = cen * (inv_std * bn_gamma) + bn_beta
    # TODO(synk): nn.Dropout(0.2) is stochastic in train mode; identity here.
    h = jnp.dot(bn.astype(compute_dtype), w1, preferred_element_type=jnp.float32) + b1
    h = jnp.maximum(h, 0.0)
    return jnp.dot(h.astype(compute_dtype), w2, preferred_element_type=jnp.float32) + b2


# ---------------------------------------------------------------------------
# Fused kernel: (emb0 + emb1) mean-pool over seq + classifier head, one call
# ---------------------------------------------------------------------------
def _fused_pool_head_kernel(e0_ref, e1_ref, bng_ref, bnb_ref, w1_ref, b1_ref,
                            w2_ref, b2_ref, o_ref, acc_ref,
                            *, seq_len, seq_tile, compute_dtype):
    s = pl.program_id(0)

    @pl.when(s == 0)
    def _():
        acc_ref[...] = jnp.zeros_like(acc_ref)

    x = e0_ref[...].astype(jnp.float32) + e1_ref[...].astype(jnp.float32)
    if seq_len % seq_tile != 0:                        # in-kernel seq-tail mask (no jnp.pad)
        pos = lax.broadcasted_iota(jnp.int32, x.shape, 1)
        x = jnp.where(pos < (seq_len - s * seq_tile), x, 0.0)
    acc_ref[...] += jnp.sum(x, axis=1)                 # reduce the seq tile

    @pl.when(s == pl.num_programs(0) - 1)
    def _():
        avg = acc_ref[...] * (1.0 / seq_len)           # pooled (B, D), still in VMEM
        logits = _head_math(avg, bng_ref[...], bnb_ref[...], w1_ref[...],
                            b1_ref[...], w2_ref[...], b2_ref[...], compute_dtype)
        o_ref[...] = logits.astype(o_ref.dtype)


def _fused_pool_head(emb0, emb1, p):
    B, S, D = emb0.shape
    itemsize = jnp.dtype(emb0.dtype).itemsize
    ts = _pick_seq_tile(B, S, D, itemsize)
    n_s = pl.cdiv(S, ts)
    H1 = p["fc1_w"].shape[1]
    C_pad = p["fc2_w"].shape[1]                        # lane-dense (128-padded) logits
    cdt = p["compute_dtype"]

    logits = pl.pallas_call(
        functools.partial(_fused_pool_head_kernel, seq_len=S, seq_tile=ts,
                          compute_dtype=cdt),
        out_shape=jax.ShapeDtypeStruct((B, C_pad), jnp.float32),
        grid_spec=pltpu.PrefetchScalarGridSpec(
            num_scalar_prefetch=0,
            grid=(n_s,),
            in_specs=[
                pl.BlockSpec((B, ts, D), lambda s: (0, s, 0)),
                pl.BlockSpec((B, ts, D), lambda s: (0, s, 0)),
                pl.BlockSpec((1, D), lambda s: (0, 0)),
                pl.BlockSpec((1, D), lambda s: (0, 0)),
                pl.BlockSpec((D, H1), lambda s: (0, 0)),
                pl.BlockSpec((1, H1), lambda s: (0, 0)),
                pl.BlockSpec((H1, C_pad), lambda s: (0, 0)),
                pl.BlockSpec((1, C_pad), lambda s: (0, 0)),
            ],
            out_specs=pl.BlockSpec((B, C_pad), lambda s: (0, 0)),
            scratch_shapes=[pltpu.VMEM((B, D), jnp.float32)],
        ),
        compiler_params=pltpu.CompilerParams(
            dimension_semantics=("arbitrary",)),       # seq axis is a reduction
    )(emb0, emb1, p["bn_gamma"], p["bn_beta"], p["fc1_w"], p["fc1_b"],
      p["fc2_w"], p["fc2_b"])
    return logits[:, :p["num_classes"]]


# ---------------------------------------------------------------------------
# Fallback path for very large batches: pool kernel + head kernel
# ---------------------------------------------------------------------------
def _pool_kernel(e0_ref, e1_ref, o_ref, acc_ref, *, seq_len, seq_tile, inv_seq):
    s = pl.program_id(1)

    @pl.when(s == 0)
    def _():
        acc_ref[...] = jnp.zeros_like(acc_ref)

    x = e0_ref[...].astype(jnp.float32) + e1_ref[...].astype(jnp.float32)
    if seq_len % seq_tile != 0:
        pos = lax.broadcasted_iota(jnp.int32, x.shape, 1)
        x = jnp.where(pos < (seq_len - s * seq_tile), x, 0.0)
    acc_ref[...] += jnp.sum(x, axis=1)

    @pl.when(s == pl.num_programs(1) - 1)
    def _():
        o_ref[...] = (acc_ref[...] * inv_seq).astype(o_ref.dtype)


def hier_pool(emb0, emb1):
    """mean(emb0 + emb1, axis=1); the sum never hits HBM.  No input padding:
    seq tail masked in-kernel; partial batch tiles only write in-bounds rows."""
    B, S, D = emb0.shape
    itemsize = jnp.dtype(emb0.dtype).itemsize
    tb = min(256, _round_up(B, 8))
    ts = _pick_seq_tile(tb, S, D, itemsize)
    grid = (pl.cdiv(B, tb), pl.cdiv(S, ts))

    return pl.pallas_call(
        functools.partial(_pool_kernel, seq_len=S, seq_tile=ts, inv_seq=1.0 / S),
        out_shape=jax.ShapeDtypeStruct((B, D), jnp.float32),
        grid_spec=pltpu.PrefetchScalarGridSpec(
            num_scalar_prefetch=0,
            grid=grid,
            in_specs=[
                pl.BlockSpec((tb, ts, D), lambda i, s: (i, s, 0)),
                pl.BlockSpec((tb, ts, D), lambda i, s: (i, s, 0)),
            ],
            out_specs=pl.BlockSpec((tb, D), lambda i, s: (i, 0)),
            scratch_shapes=[pltpu.VMEM((tb, D), jnp.float32)],
        ),
        compiler_params=pltpu.CompilerParams(
            dimension_semantics=("parallel", "arbitrary")),
    )(emb0, emb1)


def _head_kernel(x_ref, bng_ref, bnb_ref, w1_ref, b1_ref, w2_ref, b2_ref, o_ref,
                 *, compute_dtype):
    logits = _head_math(x_ref[...].astype(jnp.float32), bng_ref[...], bnb_ref[...],
                        w1_ref[...], b1_ref[...], w2_ref[...], b2_ref[...],
                        compute_dtype)
    o_ref[...] = logits.astype(o_ref.dtype)


def classifier_head(avg, p):
    # TODO(synk): for huge batches, split into a BN-stats pass + batch-tiled
    # pipelined matmul pass (M tiles of 128/256) to feed the MXU full tiles.
    B, D = avg.shape
    H1 = p["fc1_w"].shape[1]
    C_pad = p["fc2_w"].shape[1]
    logits = pl.pallas_call(
        functools.partial(_head_kernel, compute_dtype=p["compute_dtype"]),
        out_shape=jax.ShapeDtypeStruct((B, C_pad), jnp.float32),
        grid_spec=pltpu.PrefetchScalarGridSpec(
            num_scalar_prefetch=0,
            grid=(1,),
            in_specs=[
                pl.BlockSpec((B, D), lambda i: (0, 0)),
                pl.BlockSpec((1, D), lambda i: (0, 0)),
                pl.BlockSpec((1, D), lambda i: (0, 0)),
                pl.BlockSpec((D, H1), lambda i: (0, 0)),
                pl.BlockSpec((1, H1), lambda i: (0, 0)),
                pl.BlockSpec((H1, C_pad), lambda i: (0, 0)),
                pl.BlockSpec((1, C_pad), lambda i: (0, 0)),
            ],
            out_specs=pl.BlockSpec((B, C_pad), lambda i: (0, 0)),
        ),
        compiler_params=pltpu.CompilerParams(
            dimension_semantics=("arbitrary",)),
    )(avg, p["bn_gamma"], p["bn_beta"], p["fc1_w"], p["fc1_b"],
      p["fc2_w"], p["fc2_b"])
    return logits[:, :p["num_classes"]]


# ---------------------------------------------------------------------------
# Parameter prep (hoisted out of the hot path; do once per model)
# ---------------------------------------------------------------------------
def prepare_head_params(params, compute_dtype=jnp.bfloat16):
    D, H1 = params["fc1_w"].shape
    C = params["fc2_w"].shape[1]
    C_pad = _round_up(C, 128)                          # lane-dense logits block
    return {
        "bn_gamma": params["bn_gamma"].astype(jnp.float32).reshape(1, D),
        "bn_beta": params["bn_beta"].astype(jnp.float32).reshape(1, D),
        "fc1_w": params["fc1_w"].astype(compute_dtype),
        "fc1_b": params["fc1_b"].astype(jnp.float32).reshape(1, H1),
        "fc2_w": jnp.pad(params["fc2_w"].astype(compute_dtype),
                         ((0, 0), (0, C_pad - C))),
        "fc2_b": jnp.pad(params["fc2_b"].astype(jnp.float32),
                         (0, C_pad - C)).reshape(1, C_pad),
        "num_classes": int(C),
        "compute_dtype": compute_dtype,
    }


# ---------------------------------------------------------------------------
# Module forward
# ---------------------------------------------------------------------------
def _cross_entropy(logits, labels):
    logits = logits.astype(jnp.float32)
    lse = jax.nn.logsumexp(logits, axis=-1)
    picked = jnp.take_along_axis(logits, labels[:, None].astype(jnp.int32), axis=-1)[:, 0]
    return jnp.mean(lse - picked)


def hierarchical_classifier_forward(hier_embeds, params, labels=None):
    # TODO(synk): the frozen base_model backbone is external; its two
    # hierarchical embedding outputs are the inputs here.
    if "compute_dtype" not in params:                  # allow raw (un-prepped) params
        params = prepare_head_params(params)
    emb0, emb1 = hier_embeds
    B, _, D = emb0.shape
    if B <= 1024 and B * D * 4 <= (4 << 20):
        logits = _fused_pool_head(emb0, emb1, params)  # single fused kernel
    else:
        avg = hier_pool(emb0, emb1)                    # pool kernel
        logits = classifier_head(avg, params)          # head kernel
    out = {"logits": logits}
    if labels is not None:
        out["loss"] = _cross_entropy(logits, labels)   # tiny (B, 2) op, plain JAX
    return out


def forward_ref(hier_embeds, params, labels=None):
    emb0, emb1 = hier_embeds
    emb = emb0.astype(jnp.float32) + emb1.astype(jnp.float32)
    avg = jnp.mean(emb, axis=1)
    mean = jnp.mean(avg, axis=0, keepdims=True)
    var = jnp.mean((avg - mean) ** 2, axis=0, keepdims=True)
    bn = (avg - mean) / jnp.sqrt(var + _EPS_BN)
    bn = bn * params["bn_gamma"][None, :] + params["bn_beta"][None, :]
    h = jnp.maximum(bn @ params["fc1_w"] + params["fc1_b"][None, :], 0.0)
    logits = h @ params["fc2_w"] + params["fc2_b"][None, :]
    out = {"logits": logits}
    if labels is not None:
        out["loss"] = _cross_entropy(logits, labels)
    return out


# ---------------------------------------------------------------------------
# RMSNorm submodule kernel (defined on the module; unused in forward())
# ---------------------------------------------------------------------------
def _rmsnorm_kernel(x_ref, g_ref, o_ref, *, scale):
    xf = x_ref[...].astype(jnp.float32)
    sq = jnp.sum(xf * xf, axis=-1, keepdims=True)
    # rsqrt -> EUP; sqrt(dim) folded into the per-row scalar; kept in f32.
    inv_s = lax.rsqrt(jnp.maximum(sq, _EPS_NORMALIZE * _EPS_NORMALIZE)) * scale
    o_ref[...] = (xf * inv_s * g_ref[...]).astype(o_ref.dtype)


def rmsnorm(x, gamma, *, tile_rows=None):
    """F.normalize(x, dim=-1) * sqrt(dim) * gamma.  No padding: partial last
    row-block reads are discarded (per-row op) and OOB writes are dropped."""
    orig_shape = x.shape
    dim = orig_shape[-1]
    x2 = x.reshape(-1, dim)
    rows = x2.shape[0]
    itemsize = jnp.dtype(x.dtype).itemsize
    if tile_rows is None:
        budget = _per_input_block_budget_bytes()
        per_row = max(1, 4 * dim * itemsize)           # in + out, double-buffered
        tile_rows = min(1024, max(8, (budget // per_row) // 8 * 8))
    tile_rows = max(8, (tile_rows // 8) * 8)
    tile_rows = min(tile_rows, _round_up(rows, 8))

    out = pl.pallas_call(
        functools.partial(_rmsnorm_kernel, scale=float(dim) ** 0.5),
        out_shape=jax.ShapeDtypeStruct((rows, dim), x.dtype),
        grid_spec=pltpu.PrefetchScalarGridSpec(
            num_scalar_prefetch=0,
            grid=(pl.cdiv(rows, tile_rows),),
            in_specs=[
                pl.BlockSpec((tile_rows, dim), lambda i: (i, 0)),
                pl.BlockSpec((1, dim), lambda i: (0, 0)),
            ],
            out_specs=pl.BlockSpec((tile_rows, dim), lambda i: (i, 0)),
        ),
        compiler_params=pltpu.CompilerParams(
            dimension_semantics=("parallel",)),
    )(x2, gamma.reshape(1, dim).astype(jnp.float32))
    return out.reshape(orig_shape)


def rmsnorm_ref(x, gamma):
    dim = x.shape[-1]
    xf = x.astype(jnp.float32)
    norm = jnp.sqrt(jnp.sum(xf * xf, axis=-1, keepdims=True))
    y = xf / jnp.maximum(norm, _EPS_NORMALIZE) * (dim ** 0.5) * gamma.astype(jnp.float32)
    return y.astype(x.dtype)


if __name__ == "__main__":
    key = jax.random.PRNGKey(0)
    batch, seq, dim, hidden1, num_classes = 4, 8, 128, 512, 2
    ks = jax.random.split(key, 8)

    # stand-ins for base_model(..., return_hierarchical_embeds=True)
    emb0 = jax.random.normal(ks[0], (batch, seq, dim), jnp.float32)
    emb1 = jax.random.normal(ks[1], (batch, seq, dim), jnp.float32)
    labels = jnp.array([0, 1, 1, 0], dtype=jnp.int32)

    raw_params = {
        "bn_gamma": jnp.ones((dim,), jnp.float32),     # nn.BatchNorm1d init
        "bn_beta": jnp.zeros((dim,), jnp.float32),
        "fc1_w": 0.02 * jax.random.normal(ks[2], (dim, hidden1), jnp.float32),
        "fc1_b": 0.01 * jax.random.normal(ks[3], (hidden1,), jnp.float32),
        "fc2_w": 0.02 * jax.random.normal(ks[4], (hidden1, num_classes), jnp.float32),
        "fc2_b": 0.01 * jax.random.normal(ks[5], (num_classes,), jnp.float32),
    }
    prepared = prepare_head_params(raw_params)         # hoisted: done once

    out = hierarchical_classifier_forward((emb0, emb1), prepared, labels)
    out = jax.block_until_ready(out)
    ref = forward_ref((emb0, emb1), raw_params, labels)

    assert out["logits"].shape == (batch, num_classes)
    # bf16 MXU compute with f32 accumulation vs f32 reference -> modest tolerance
    assert jnp.allclose(out["logits"], ref["logits"], atol=2e-2, rtol=2e-2), "logits mismatch"
    assert jnp.allclose(out["loss"], ref["loss"], atol=2e-2, rtol=2e-2), "loss mismatch"

    # Standalone check of the RMSNorm submodule kernel (not used in forward()).
    x = jax.random.normal(ks[6], (batch, seq, dim), jnp.float32)
    gamma = jnp.ones((dim,), jnp.float32)
    y = jax.block_until_ready(rmsnorm(x, gamma))
    assert jnp.allclose(y, rmsnorm_ref(x, gamma), atol=1e-4, rtol=1e-4), "rmsnorm mismatch"

    print("KERNEL_OK")
</pallas_src>

<mosaic_0001>
module attributes {stable_mosaic.version = 11 : i64} {
  func.func @_fused_pool_head_kernel(%arg0: i32, %arg1: memref<4x8x128xf32, #tpu.memory_space<vmem>>, %arg2: memref<4x8x128xf32, #tpu.memory_space<vmem>>, %arg3: memref<1x128xf32, #tpu.memory_space<vmem>>, %arg4: memref<1x128xf32, #tpu.memory_space<vmem>>, %arg5: memref<128x512xbf16, #tpu.memory_space<vmem>>, %arg6: memref<1x512xf32, #tpu.memory_space<vmem>>, %arg7: memref<512x128xbf16, #tpu.memory_space<vmem>>, %arg8: memref<1x128xf32, #tpu.memory_space<vmem>>, %arg9: memref<4x128xf32, #tpu.memory_space<vmem>>, %arg10: memref<4x128xf32, #tpu.memory_space<vmem>>) attributes {dimension_semantics = [#tpu.dimension_semantics<arbitrary>], iteration_bounds = array<i64: 1>, scalar_prefetch = 0 : i64, scratch_operands = 1 : i64, tpu.core_type = #tpu.core_type<tc>, window_params = [{transform_indices = @transform_0, window_bounds = array<i64: 4, 8, 128>}, {transform_indices = @transform_1, window_bounds = array<i64: 4, 8, 128>}, {pipeline_mode = #tpu.pipeline_mode<synchronous>, transform_indices = @transform_2, window_bounds = array<i64: 1, 128>}, {pipeline_mode = #tpu.pipeline_mode<synchronous>, transform_indices = @transform_3, window_bounds = array<i64: 1, 128>}, {pipeline_mode = #tpu.pipeline_mode<synchronous>, transform_indices = @transform_4, window_bounds = array<i64: 128, 512>}, {pipeline_mode = #tpu.pipeline_mode<synchronous>, transform_indices = @transform_5, window_bounds = array<i64: 1, 512>}, {pipeline_mode = #tpu.pipeline_mode<synchronous>, transform_indices = @transform_6, window_bounds = array<i64: 512, 128>}, {pipeline_mode = #tpu.pipeline_mode<synchronous>, transform_indices = @transform_7, window_bounds = array<i64: 1, 128>}, {pipeline_mode = #tpu.pipeline_mode<synchronous>, transform_indices = @transform_8, window_bounds = array<i64: 4, 128>}]} {
    %c0_i32 = arith.constant 0 : i32
    %0 = arith.cmpi eq, %arg0, %c0_i32 : i32
    %1 = arith.extui %0 : i1 to i32
    %c0_i32_0 = arith.constant 0 : i32
    %2 = arith.cmpi ne, %1, %c0_i32_0 : i32
    scf.if %2 {
      %cst_12 = arith.constant 0.000000e+00 : f32
      %13 = vector.broadcast %cst_12 : f32 to vector<4x128xf32>
      %c0_13 = arith.constant 0 : index
      %c0_14 = arith.constant 0 : index
      %14 = vector.load %arg10[%c0_13, %c0_14] : memref<4x128xf32, #tpu.memory_space<vmem>>, vector<4x128xf32>
      tpu.vector_store %arg10[%c0_13, %c0_14], %13 {strides = array<i32>} : memref<4x128xf32, #tpu.memory_space<vmem>>, vector<4x128xf32>,
    } else {
    }
    %c0 = arith.constant 0 : index
    %c0_1 = arith.constant 0 : index
    %c0_2 = arith.constant 0 : index
    %3 = vector.load %arg1[%c0, %c0_1, %c0_2] : memref<4x8x128xf32, #tpu.memory_space<vmem>>, vector<4x8x128xf32>
    %c0_3 = arith.constant 0 : index
    %c0_4 = arith.constant 0 : index
    %c0_5 = arith.constant 0 : index
    %4 = vector.load %arg2[%c0_3, %c0_4, %c0_5] : memref<4x8x128xf32, #tpu.memory_space<vmem>>, vector<4x8x128xf32>
    %5 = arith.addf %3, %4 : vector<4x8x128xf32>
    %c0_6 = arith.constant 0 : index
    %c0_7 = arith.constant 0 : index
    %6 = vector.load %arg10[%c0_6, %c0_7] : memref<4x128xf32, #tpu.memory_space<vmem>>, vector<4x128xf32>
    %cst = arith.constant dense<0.000000e+00> : vector<4x128xf32>
    %7 = vector.multi_reduction <add>, %5, %cst [1] : vector<4x8x128xf32> to vector<4x128xf32>
    %8 = arith.addf %6, %7 : vector<4x128xf32>
    %c0_8 = arith.constant 0 : index
    %c0_9 = arith.constant 0 : index
    %9 = vector.load %arg10[%c0_8, %c0_9] : memref<4x128xf32, #tpu.memory_space<vmem>>, vector<4x128xf32>
    tpu.vector_store %arg10[%c0_8, %c0_9], %8 {strides = array<i32>} : memref<4x128xf32, #tpu.memory_space<vmem>>, vector<4x128xf32>,
    %c0_i32_10 = arith.constant 0 : i32
    %10 = arith.cmpi eq, %arg0, %c0_i32_10 : i32
    %11 = arith.extui %10 : i1 to i32
    %c0_i32_11 = arith.constant 0 : i32
    %12 = arith.cmpi ne, %11, %c0_i32_11 : i32
    scf.if %12 {
      %c0_12 = arith.constant 0 : index
      %c0_13 = arith.constant 0 : index
      %13 = vector.load %arg10[%c0_12, %c0_13] : memref<4x128xf32, #tpu.memory_space<vmem>>, vector<4x128xf32>
      %cst_14 = arith.constant 1.250000e-01 : f32
      %14 = vector.broadcast %cst_14 : f32 to vector<4x128xf32>
      %15 = arith.mulf %13, %14 : vector<4x128xf32>
      %c0_15 = arith.constant 0 : index
      %c0_16 = arith.constant 0 : index
      %16 = vector.load %arg3[%c0_15, %c0_16] : memref<1x128xf32, #tpu.memory_space<vmem>>, vector<1x128xf32>
      %c0_17 = arith.constant 0 : index
      %c0_18 = arith.constant 0 : index
      %17 = vector.load %arg4[%c0_17, %c0_18] : memref<1x128xf32, #tpu.memory_space<vmem>>, vector<1x128xf32>
      %c0_19 = arith.constant 0 : index
      %c0_20 = arith.constant 0 : index
      %18 = vector.load %arg5[%c0_19, %c0_20] : memref<128x512xbf16, #tpu.memory_space<vmem>>, vector<128x512xbf16>
      %c0_21 = arith.constant 0 : index
      %c0_22 = arith.constant 0 : index
      %19 = vector.load %arg6[%c0_21, %c0_22] : memref<1x512xf32, #tpu.memory_space<vmem>>, vector<1x512xf32>
      %c0_23 = arith.constant 0 : index
      %c0_24 = arith.constant 0 : index
      %20 = vector.load %arg7[%c0_23, %c0_24] : memref<512x128xbf16, #tpu.memory_space<vmem>>, vector<512x128xbf16>
      %c0_25 = arith.constant 0 : index
      %c0_26 = arith.constant 0 : index
      %21 = vector.load %arg8[%c0_25, %c0_26] : memref<1x128xf32, #tpu.memory_space<vmem>>, vector<1x128xf32>
      %cst_27 = arith.constant dense<0.000000e+00> : vector<128xf32>
      %22 = vector.multi_reduction <add>, %15, %cst_27 [0] : vector<4x128xf32> to vector<128xf32>
      %23 = vector.shape_cast %22 : vector<128xf32> to vector<1x128xf32>
      %cst_28 = arith.constant 2.500000e-01 : f32
      %24 = vector.broadcast %cst_28 : f32 to vector<1x128xf32>
      %25 = arith.mulf %23, %24 : vector<1x128xf32>
      %26 = vector.broadcast %25 : vector<1x128xf32> to vector<4x128xf32>
      %27 = arith.subf %15, %26 : vector<4x128xf32>
      %28 = arith.mulf %27, %27 : vector<4x128xf32>
      %cst_29 = arith.constant dense<0.000000e+00> : vector<128xf32>
      %29 = vector.multi_reduction <add>, %28, %cst_29 [0] : vector<4x128xf32> to vector<128xf32>
      %30 = vector.shape_cast %29 : vector<128xf32> to vector<1x128xf32>
      %cst_30 = arith.constant 2.500000e-01 : f32
      %31 = vector.broadcast %cst_30 : f32 to vector<1x128xf32>
      %32 = arith.mulf %30, %31 : vector<1x128xf32>
      %cst_31 = arith.constant 9.99999974E-6 : f32
      %33 = vector.broadcast %cst_31 : f32 to vector<1x128xf32>
      %34 = arith.addf %32, %33 : vector<1x128xf32>
      %35 = math.rsqrt %34 : vector<1x128xf32>
      %36 = arith.mulf %35, %16 : vector<1x128xf32>
      %37 = vector.broadcast %36 : vector<1x128xf32> to vector<4x128xf32>
      %38 = arith.mulf %27, %37 : vector<4x128xf32>
      %39 = vector.broadcast %17 : vector<1x128xf32> to vector<4x128xf32>
      %40 = arith.addf %38, %39 : vector<4x128xf32>
      %41 = arith.truncf %40 : vector<4x128xf32> to vector<4x128xbf16>
      %cst_32 = arith.constant dense<0.000000e+00> : vector<4x512xf32>
      %42 = tpu.matmul %41, %18, %cst_32 {dimension_numbers = #tpu.dot_dimension_numbers<[1], [0], [0], [1], [0, 0, 1, 1], [], []>} : vector<4x128xbf16>, vector<128x512xbf16>, vector<4x512xf32> -> vector<4x512xf32>
      %43 = vector.broadcast %19 : vector<1x512xf32> to vector<4x512xf32>
      %44 = arith.addf %42, %43 : vector<4x512xf32>
      %cst_33 = arith.constant 0.000000e+00 : f32
      %45 = vector.broadcast %cst_33 : f32 to vector<4x512xf32>
      %46 = arith.maximumf %44, %45 : vector<4x512xf32>
      %47 = arith.truncf %46 : vector<4x512xf32> to vector<4x512xbf16>
      %cst_34 = arith.constant dense<0.000000e+00> : vector<4x128xf32>
      %48 = tpu.matmul %47, %20, %cst_34 {dimension_numbers = #tpu.dot_dimension_numbers<[1], [0], [0], [1], [0, 0, 1, 1], [], []>} : vector<4x512xbf16>, vector<512x128xbf16>, vector<4x128xf32> -> vector<4x128xf32>
      %49 = vector.broadcast %21 : vector<1x128xf32> to vector<4x128xf32>
      %50 = arith.addf %48, %49 : vector<4x128xf32>
      %c0_35 = arith.constant 0 : index
      %c0_36 = arith.constant 0 : index
      %51 = vector.load %arg9[%c0_35, %c0_36] : memref<4x128xf32, #tpu.memory_space<vmem>>, vector<4x128xf32>
      tpu.vector_store %arg9[%c0_35, %c0_36], %50 {strides = array<i32>} : memref<4x128xf32, #tpu.memory_space<vmem>>, vector<4x128xf32>,
    } else {
    }
    return
  }
  func.func @transform_0(%arg0: i32) -> (i32, i32, i32) {
    %c0_i32 = arith.constant 0 : i32
    %c0_i32_0 = arith.constant 0 : i32
    %c0_i32_1 = arith.constant 0 : i32
    return %c0_i32, %arg0, %c0_i32_0 : i32, i32, i32
  }
  func.func @transform_1(%arg0: i32) -> (i32, i32, i32) {
    %c0_i32 = arith.constant 0 : i32
    %c0_i32_0 = arith.constant 0 : i32
    %c0_i32_1 = arith.constant 0 : i32
    return %c0_i32, %arg0, %c0_i32_0 : i32, i32, i32
  }
  func.func @transform_2(%arg0: i32) -> (i32, i32) {
    %c0_i32 = arith.constant 0 : i32
    %c0_i32_0 = arith.constant 0 : i32
    %c0_i32_1 = arith.constant 0 : i32
    return %c0_i32, %c0_i32_0 : i32, i32
  }
  func.func @transform_3(%arg0: i32) -> (i32, i32) {
    %c0_i32 = arith.constant 0 : i32
    %c0_i32_0 = arith.constant 0 : i32
    %c0_i32_1 = arith.constant 0 : i32
    return %c0_i32, %c0_i32_0 : i32, i32
  }
  func.func @transform_4(%arg0: i32) -> (i32, i32) {
    %c0_i32 = arith.constant 0 : i32
    %c0_i32_0 = arith.constant 0 : i32
    %c0_i32_1 = arith.constant 0 : i32
    return %c0_i32, %c0_i32_0 : i32, i32
  }
  func.func @transform_5(%arg0: i32) -> (i32, i32) {
    %c0_i32 = arith.constant 0 : i32
    %c0_i32_0 = arith.constant 0 : i32
    %c0_i32_1 = arith.constant 0 : i32
    return %c0_i32, %c0_i32_0 : i32, i32
  }
  func.func @transform_6(%arg0: i32) -> (i32, i32) {
    %c0_i32 = arith.constant 0 : i32
    %c0_i32_0 = arith.constant 0 : i32
    %c0_i32_1 = arith.constant 0 : i32
    return %c0_i32, %c0_i32_0 : i32, i32
  }
  func.func @transform_7(%arg0: i32) -> (i32, i32) {
    %c0_i32 = arith.constant 0 : i32
    %c0_i32_0 = arith.constant 0 : i32
    %c0_i32_1 = arith.constant 0 : i32
    return %c0_i32, %c0_i32_0 : i32, i32
  }
  func.func @transform_8(%arg0: i32) -> (i32, i32) {
    %c0_i32 = arith.constant 0 : i32
    %c0_i32_0 = arith.constant 0 : i32
    %c0_i32_1 = arith.constant 0 : i32
    return %c0_i32, %c0_i32_0 : i32, i32
  }
}

</mosaic_0001>

<bundles_post_ra>
// kernel: tpu_custom_call.1
= control target key start
LH: loop header
LB: loop body
LE: loop exit
PB: predicated region body
PF: predicated region fallthrough
CT: control target
= control target key end

     0   :  { %13 = vsyncpa [#allocation4], 0  ;;  %s1318_s0 = inlined_call_operand.hbm [shape: f32[4,8,128], index: 0, kind: input, shape index: {}]   ;;  %s1319_s1 = inlined_call_operand.hbm [shape: f32[4,8,128], index: 1, kind: input, shape index: {}]   ;;  %s1320_s2 = inlined_call_operand.vmem [shape: f32[1,128], index: 2, kind: input, shape index: {}]   ;;  %s1321_s3 = inlined_call_operand.vmem [shape: f32[1,128], index: 3, kind: input, shape index: {}]   ;;  %s1322_s4 = inlined_call_operand.hbm [shape: bf16[128,512], index: 4, kind: input, shape index: {}]   ;;  %s1323_s5 = inlined_call_operand.vmem [shape: f32[1,512], index: 5, kind: input, shape index: {}]   ;;  %s1324_s6 = inlined_call_operand.hbm [shape: bf16[512,128], index: 6, kind: input, shape index: {}]   ;;  %s1325_s7 = inlined_call_operand.vmem [shape: f32[1,128], index: 7, kind: input, shape index: {}]   ;;  %s1326_s8 = inlined_call_operand.hbm [shape: f32[4,128], index: 8, kind: output, shape index: {}]  }
   0x1   :  { %14 = vsyncpa [#allocation7], 0 }
   0x2   :  { %15 = vsyncpa [#allocation10], 0 }
   0x3   :  { %16 = vsyncpa [#allocation5], 0  ;;  %s1171_s27 = smov [#allocation6]   ;;  %s1172_s29 = smov [#allocation3]  }
   0x4   :  { %s34_s28 = sshll.u32 %s1171_s27, 4  ;;  %s22_s30 = sshll.u32 %s1172_s29, 4  ;;  %s35_s28 = int_to_ptr.vmem [resolvable:$true] %s34_s28  ;;  %s1229_s30 = int_to_ptr.vmem [resolvable:$true] %s22_s30 }
   0x5   :  { %s1053_s11 = scalar_lea.hbm %s1319_s1, 512 }
   0x6   :  { %p1054_p0 = scmp.ne.s32.totalorder %s1319_s1, %s1053_s11  ;;  %p1057_p1 = scmp.lt.u32.totalorder %s1053_s11, %s1319_s1 }
   0x8   :  { %p1059_p2 = pnand %p1057_p1, %p1054_p0 }
   0xa   :  { %1062 = shalt.err (!%p1059_p2)
}
   0xb   :  { %s1063_s16 = scalar_lea.vmem %s35_s28, 512  ;;  %p1068_p4 = scmp.lt.s32.totalorder %s35_s28, %s35_s28 }
   0xc   :  { %p1064_p3 = scmp.ne.s32.totalorder %s35_s28, %s1063_s16  ;;  %p1069_p5 = scmp.lt.s32.totalorder %s1063_s16, %s1063_s16 }
   0xe   :  { %p1070_p6 = por %p1069_p5, %p1068_p4 }
  0x10   :  { %p1071_p7 = pnand %p1070_p6, %p1064_p3 }
  0x12   :  { %1074 = shalt.err (!%p1071_p7)
}
  0x13   :  { %s1173_s17 = smov 128   ;;  %s1174_s18 = smov 8  }
  0x14   :  { %40 = dma.hbm_to_vmem [thread:$0]  %s1319_s1, 512, %s35_s28, [#allocation7], %s1173_s17, %s1173_s17, %s1174_s18  }
  0x15   :  { %s1075_s23 = scalar_lea.hbm %s1318_s0, 512 }
  0x16   :  { %p1076_p8 = scmp.ne.s32.totalorder %s1318_s0, %s1075_s23  ;;  %p1079_p9 = scmp.lt.u32.totalorder %s1075_s23, %s1318_s0 }
  0x18   :  { %p1081_p10 = pnand %p1079_p9, %p1076_p8 }
  0x1a   :  { %1084 = shalt.err (!%p1081_p10)
}
  0x1b   :  { %s1085_s29 = scalar_lea.vmem %s1229_s30, 512  ;;  %p1090_p12 = scmp.lt.s32.totalorder %s1229_s30, %s1229_s30 }
  0x1c   :  { %p1086_p11 = scmp.ne.s32.totalorder %s1229_s30, %s1085_s29  ;;  %p1091_p13 = scmp.lt.s32.totalorder %s1085_s29, %s1085_s29 }
  0x1e   :  { %p1092_p0 = por %p1091_p13, %p1090_p12 }
  0x20   :  { %p1093_p1 = pnand %p1092_p0, %p1086_p11 }
  0x22   :  { %1096 = shalt.err (!%p1093_p1)
}
  0x23   :  { %28 = dma.hbm_to_vmem [thread:$0]  %s1318_s0, 512, %s1229_s30, [#allocation4], %s1173_s17, %s1173_s17, %s1174_s18  }
  0x24   :  { %s1175_s9 = smov [#allocation8]   ;;  %s1097_s13 = scalar_lea.hbm %s1322_s4, 4096 }
  0x25   :  { %s50_s10 = sshll.u32 %s1175_s9, 4  ;;  %p1098_p2 = scmp.ne.s32.totalorder %s1322_s4, %s1097_s13  ;;  %s51_s10 = int_to_ptr.vmem [resolvable:$true] %s50_s10 }
  0x26   :  { %p1101_p3 = scmp.lt.u32.totalorder %s1097_s13, %s1322_s4 }
  0x28   :  { %p1103_p4 = pnand %p1101_p3, %p1098_p2 }
  0x2a   :  { %1106 = shalt.err (!%p1103_p4)
}
  0x2b   :  { %s1107_s20 = scalar_lea.vmem %s51_s10, 4096  ;;  %p1112_p6 = scmp.lt.s32.totalorder %s51_s10, %s51_s10 }
  0x2c   :  { %p1108_p5 = scmp.ne.s32.totalorder %s51_s10, %s1107_s20  ;;  %p1113_p7 = scmp.lt.s32.totalorder %s1107_s20, %s1107_s20 }
  0x2e   :  { %p1114_p8 = por %p1113_p7, %p1112_p6 }
  0x30   :  { %p1115_p9 = pnand %p1114_p8, %p1108_p5 }
  0x32   :  { %1118 = shalt.err (!%p1115_p9)
}
  0x33   :  { %s1176_s0 = smov 256   ;;  %s1177_s30 = smov 16  }
  0x34   :  { %56 = dma.hbm_to_vmem [thread:$0]  %s1322_s4, 4096, %s51_s10, [#allocation7], %s1176_s0, %s1176_s0, %s1177_s30  }
  0x35   :  { %s1178_s21 = smov [#allocation9]   ;;  %s1119_s25 = scalar_lea.hbm %s1324_s6, 4096 }
  0x36   :  { %s64_s22 = sshll.u32 %s1178_s21, 4  ;;  %p1120_p10 = scmp.ne.s32.totalorder %s1324_s6, %s1119_s25  ;;  %s65_s22 = int_to_ptr.vmem [resolvable:$true] %s64_s22 }
  0x37   :  { %p1123_p11 = scmp.lt.u32.totalorder %s1119_s25, %s1324_s6 }
  0x39   :  { %p1125_p12 = pnand %p1123_p11, %p1120_p10 }
  0x3b   :  { %1128 = shalt.err (!%p1125_p12)
}
  0x3c   :  { %s1129_s28 = scalar_lea.vmem %s65_s22, 4096  ;;  %p1134_p0 = scmp.lt.s32.totalorder %s65_s22, %s65_s22 }
  0x3d   :  { %p1130_p13 = scmp.ne.s32.totalorder %s65_s22, %s1129_s28  ;;  %p1135_p1 = scmp.lt.s32.totalorder %s1129_s28, %s1129_s28 }
  0x3f   :  { %p1136_p2 = por %p1135_p1, %p1134_p0 }
  0x41   :  { %p1137_p3 = pnand %p1136_p2, %p1130_p13 }
  0x43   :  { %1140 = shalt.err (!%p1137_p3)
}
  0x44   :  { %s1179_s4 = smov 64   ;;  %s1180_s9 = smov 4  }
  0x45   :  { %70 = dma.hbm_to_vmem [thread:$0]  %s1324_s6, 4096, %s65_s22, [#allocation10], %s1179_s4, %s1179_s4, %s1180_s9  }
  0x46   :  { %1163 = dma.done.wait [#allocation4], 512  }
  0x47   :  { %1164 = vsyncadd [#allocation4], 4294966784 }
  0x48   :  { %1165 = dma.done.wait [#allocation7], 4608  }
  0x49   :  { %1166 = vsyncadd [#allocation7], 4294962688 }
  0x4a   :  { %1167 = dma.done.wait [#allocation10], 4096  }
  0x4b   :  { %1168 = vsyncadd [#allocation10], 4294963200  ;;  %v1181_v0 = vmov 0   ;;  %v1182_v1 = vmov 0.0   ;;  %v971_v2 = vld [vmem:[#allocation8 + $0x4] ss:$16 sps:$4 sm:$0xff]  }
  0x4c   :  { %494 = vmatprep.mubr.bf16.mxu0 %v1181_v0  ;;  %535 = vmatprep.mubr.bf16.mxu1 %v1181_v0  ;;  %90 = vst [vmem:[#allocation2] sm:$0xf] %v1182_v1  ;;  %v973_v3 = vld [vmem:[#allocation8 + $0xc] ss:$16 sps:$4 sm:$0xff]   ;;  %v975_v4 = vld [vmem:[#allocation8] ss:$16 sps:$4 sm:$0xff]  }
  0x4d   :  { %462 = vmatprep.subr.bf16.mxu0 %v971_v2  ;;  %v976_v5 = vld [vmem:[#allocation8 + $0x8] ss:$16 sps:$4 sm:$0xff]   ;;  %503 = vmatprep.subr.bf16.mxu1 %v973_v3  ;;  %v977_v6 = vld [vmem:[#allocation8 + $0x24] ss:$16 sps:$4 sm:$0xff]   ;;  %v979_v7 = vld [vmem:[#allocation8 + $0x2c] ss:$16 sps:$4 sm:$0xff]  }
  0x4e   :  { %463 = vmatpush1.bf16.msra.mxu0 %v975_v4  ;;  %504 = vmatpush1.bf16.msra.mxu1 %v976_v5  ;;  %v981_v8 = vld [vmem:[#allocation8 + $0x20] ss:$16 sps:$4 sm:$0xff]   ;;  %v982_v9 = vld [vmem:[#allocation8 + $0x28] ss:$16 sps:$4 sm:$0xff]   ;;  %v983_v10 = vld [vmem:[#allocation8 + $0x44] ss:$16 sps:$4 sm:$0xff]  }
  0x4f   :  { %464 = vmatprep.subr.bf16.mxu0 %v977_v6  ;;  %505 = vmatprep.subr.bf16.mxu1 %v979_v7  ;;  %v985_v11 = vld [vmem:[#allocation8 + $0x4c] ss:$16 sps:$4 sm:$0xff]   ;;  %v987_v12 = vld [vmem:[#allocation8 + $0x40] ss:$16 sps:$4 sm:$0xff]   ;;  %v988_v13 = vld [vmem:[#allocation8 + $0x48] ss:$16 sps:$4 sm:$0xff]  }
  0x50   :  { %v989_v14 = vld [vmem:[#allocation8 + $0x64] ss:$16 sps:$4 sm:$0xff]   ;;  %v991_v15 = vld [vmem:[#allocation8 + $0x6c] ss:$16 sps:$4 sm:$0xff]   ;;  %v993_v16 = vld [vmem:[#allocation8 + $0x60] ss:$16 sps:$4 sm:$0xff]  }
  0x51   :  { %v994_v17 = vld [vmem:[#allocation8 + $0x68] ss:$16 sps:$4 sm:$0xff]   ;;  %v995_v18 = vld [vmem:[#allocation8 + $0x84] ss:$16 sps:$4 sm:$0xff]   ;;  %v997_v19 = vld [vmem:[#allocation8 + $0x8c] ss:$16 sps:$4 sm:$0xff]  }
  0x52   :  { %465 = vmatpush1.bf16.msra.mxu0 %v981_v8  ;;  %506 = vmatpush1.bf16.msra.mxu1 %v982_v9  ;;  %v999_v20 = vld [vmem:[#allocation8 + $0x80] ss:$16 sps:$4 sm:$0xff]   ;;  %v1000_v21 = vld [vmem:[#allocation8 + $0x88] ss:$16 sps:$4 sm:$0xff]   ;;  %v1001_v22 = vld [vmem:[#allocation8 + $0xa4] ss:$16 sps:$4 sm:$0xff]  }
  0x53   :  { %466 = vmatprep.subr.bf16.mxu0 %v983_v10  ;;  %507 = vmatprep.subr.bf16.mxu1 %v985_v11  ;;  %v1003_v23 = vld [vmem:[#allocation8 + $0xac] ss:$16 sps:$4 sm:$0xff]   ;;  %v1005_v24 = vld [vmem:[#allocation8 + $0xa0] ss:$16 sps:$4 sm:$0xff]   ;;  %v1006_v25 = vld [vmem:[#allocation8 + $0xa8] ss:$16 sps:$4 sm:$0xff]  }
  0x54   :  { %v1007_v26 = vld [vmem:[#allocation8 + $0xc4] ss:$16 sps:$4 sm:$0xff]   ;;  %v1009_v27 = vld [vmem:[#allocation8 + $0xcc] ss:$16 sps:$4 sm:$0xff]   ;;  %v1011_v30 = vld [vmem:[#allocation8 + $0xc0] ss:$16 sps:$4 sm:$0xff]  }
  0x55   :  { %v91_v28 = vld [vmem:[#allocation3] sm:$0xff]  ;;  %v92_v29 = vld [vmem:[#allocation3 + $0x8] sm:$0xff]  ;;  %v93_v31 = vld [vmem:[#allocation3 + $0x10] sm:$0xff]  ;;  %vm132_vm0 = vcmask 1041409   ;;  %vm134_vm1 = vcmask 1042434   ;;  %vm136_vm2 = vcmask 1043459  }
  0x56   :  { %467 = vmatpush1.bf16.msra.mxu0 %v987_v12  ;;  %508 = vmatpush1.bf16.msra.mxu1 %v988_v13  ;;  %v94_v32 = vld [vmem:[#allocation3 + $0x18] sm:$0xff]  ;;  %v95_v33 = vld [vmem:[#allocation6] sm:$0xff]  ;;  %v96_v34 = vld [vmem:[#allocation6 + $0x8] sm:$0xff]  ;;  %vm246_vm3 = vcmask 1043456   ;;  %s1183_s16 = smov [#allocation11]  }
  0x57   :  { %468 = vmatprep.subr.bf16.mxu0 %v989_v14  ;;  %509 = vmatprep.subr.bf16.mxu1 %v991_v15  ;;  %v97_v35 = vld [vmem:[#allocation6 + $0x10] sm:$0xff]  ;;  %v98_v36 = vld [vmem:[#allocation6 + $0x18] sm:$0xff]  ;;  %v99_v37 = vadd.f32 %v95_v33, %v91_v28  ;;  %v100_v41 = vadd.f32 %v96_v34, %v92_v29  ;;  %v1019_v54 = vld [vmem:[#allocation9 + $0x40] sm:$0xff]   ;;  %v268_v34 = vlaneseq  ;;  %s837_s19 = sshll.u32 %s1183_s16, 4  ;;  %s838_s19 = int_to_ptr.vmem [resolvable:$true] %s837_s19 }
  0x58   :  { %v1012_v38 = vld [vmem:[#allocation8 + $0xc8] ss:$16 sps:$4 sm:$0xff]   ;;  %v1013_v39 = vld [vmem:[#allocation8 + $0xe4] ss:$16 sps:$4 sm:$0xff]   ;;  %v1015_v40 = vld [vmem:[#allocation8 + $0xec] ss:$16 sps:$4 sm:$0xff]   ;;  %v101_v42 = vadd.f32 %v97_v35, %v93_v31  ;;  %v102_v43 = vadd.f32 %v98_v36, %v94_v32  ;;  %p1146_p5 = scmp.lt.s32.totalorder %s838_s19, %s838_s19 }
  0x59   :  { %v104_v44 = vrot.slane %v99_v37, 4  ;;  %v1017_v45 = vld [vmem:[#allocation8 + $0xe0] ss:$16 sps:$4 sm:$0xff]   ;;  %v1018_v46 = vld [vmem:[#allocation8 + $0xe8] ss:$16 sps:$4 sm:$0xff]   ;;  %v110_v47 = vrot.slane %v100_v41, 4 }
  0x5a   :  { %469 = vmatpush1.bf16.msra.mxu0 %v993_v16  ;;  %510 = vmatpush1.bf16.msra.mxu1 %v994_v17  ;;  %v116_v48 = vrot.slane %v101_v42, 4  ;;  %v122_v49 = vrot.slane %v102_v43, 4  ;;  %v1020_v56 = vld [vmem:[#allocation9 + $0xc0] sm:$0xff]   ;;  %v103_v8 = vld [vmem:[#allocation2] sm:$0xf]  ;;  %v1284_v35 = vshrl.u32 %v268_v34, 7 }
  0x5b   :  { %470 = vmatprep.subr.bf16.mxu0 %v995_v18  ;;  %511 = vmatprep.subr.bf16.mxu1 %v997_v19  ;;  %v105_v50 = vadd.f32 %v104_v44, %v99_v37  ;;  %v111_v51 = vadd.f32 %v110_v47, %v100_v41  ;;  %v146_v36 = vld [vmem:[%s1320_s2] sm:$0x1]  ;;  %v1021_v44 = vld [vmem:[#allocation9] sm:$0xff]   ;;  %v1023_v47 = vld [vmem:[#allocation9 + $0x48] sm:$0xff]   ;;  %s1141_s20 = scalar_lea.vmem %s838_s19, 64 }
  0x5c   :  { %v117_v52 = vadd.f32 %v116_v48, %v101_v42  ;;  %v123_v53 = vadd.f32 %v122_v49, %v102_v43  ;;  %v270_v37 = vsub.s32 0, %v1284_v35  ;;  %v848_v41 = vld [vmem:[%s1321_s3] ss:$0 sm:$0xff]  ;;  %v1024_v48 = vld [vmem:[#allocation9 + $0xc8] sm:$0xff]   ;;  %p1142_p4 = scmp.ne.s32.totalorder %s838_s19, %s1141_s20  ;;  %p1147_p6 = scmp.lt.s32.totalorder %s1141_s20, %s1141_s20 }
  0x5d   :  { %v106_v55 = vrot.slane %v105_v50, 2  ;;  %v112_v57 = vrot.slane %v111_v51, 2  ;;  %v1025_v49 = vld [vmem:[#allocation9 + $0x8] sm:$0xff]  }
  0x5e   :  { %471 = vmatpush1.bf16.msra.mxu0 %v999_v20  ;;  %512 = vmatpush1.bf16.msra.mxu1 %v1000_v21  ;;  %v118_v58 = vrot.slane %v117_v52, 2  ;;  %v124_v59 = vrot.slane %v123_v53, 2  ;;  %p1148_p7 = por %p1147_p6, %p1146_p5 }
  0x5f   :  { %472 = vmatprep.subr.bf16.mxu0 %v1001_v22  ;;  %513 = vmatprep.subr.bf16.mxu1 %v1003_v23  ;;  %v107_v60 = vadd.f32 %v106_v55, %v105_v50  ;;  %v113_v61 = vadd.f32 %v112_v57, %v111_v51  ;;  %v1026_v50 = vld [vmem:[#allocation9 + $0x88] sm:$0xff]   ;;  %v1027_v51 = vld [vmem:[#allocation9 + $0x50] sm:$0xff]   ;;  %v1031_v55 = vld [vmem:[#allocation9 + $0x58] sm:$0xff]  }
  0x60   :  { %v119_v62 = vadd.f32 %v118_v58, %v117_v52  ;;  %v125_v63 = vadd.f32 %v124_v59, %v123_v53  ;;  %v1028_v52 = vld [vmem:[#allocation9 + $0xd0] sm:$0xff]   ;;  %v1033_v57 = vld [vmem:[#allocation9 + $0x18] sm:$0xff]   ;;  %v1035_v59 = vld [vmem:[#allocation9 + $0x60] sm:$0xff]   ;;  %p1149_p8 = pnand %p1148_p7, %p1142_p4 }
  0x61   :  { %v108_v0 = vrot.slane %v107_v60, 1  ;;  %v114_v1 = vrot.slane %v113_v61, 1  ;;  %v1029_v53 = vld [vmem:[#allocation9 + $0x10] sm:$0xff]   ;;  %v1034_v58 = vld [vmem:[#allocation9 + $0x98] sm:$0xff]  }
  0x62   :  { %473 = vmatpush1.bf16.msra.mxu0 %v1005_v24  ;;  %514 = vmatpush1.bf16.msra.mxu1 %v1006_v25  ;;  %v120_v2 = vrot.slane %v119_v62, 1  ;;  %v126_v3 = vrot.slane %v125_v63, 1 }
  0x63   :  { %474 = vmatprep.subr.bf16.mxu0 %v1007_v26  ;;  %515 = vmatprep.subr.bf16.mxu1 %v1009_v27  ;;  %v109_v4 = vadd.f32 %v108_v0, %v107_v60  ;;  %v115_v5 = vadd.f32 %v114_v1, %v113_v61  ;;  %v1036_v60 = vld [vmem:[#allocation9 + $0xe0] sm:$0xff]   ;;  %v1040_v0 = vld [vmem:[#allocation9 + $0xe8] sm:$0xff]  }
  0x64   :  { %v121_v6 = vadd.f32 %v120_v2, %v119_v62  ;;  %v127_v7 = vadd.f32 %v126_v3, %v125_v63  ;;  %v1037_v61 = vld [vmem:[#allocation9 + $0x20] sm:$0xff]   ;;  %v1039_v63 = vld [vmem:[#allocation9 + $0x68] sm:$0xff]   ;;  %v1043_v3 = vld [vmem:[#allocation9 + $0x70] sm:$0xff]  }
  0x65   :  { %v133_v9 = vsel %vm132_vm0, %v115_v5, %v109_v4  ;;  %v1038_v62 = vld [vmem:[#allocation9 + $0xa0] sm:$0xff]   ;;  %v1041_v1 = vld [vmem:[#allocation9 + $0x28] sm:$0xff]   ;;  %v1044_v4 = vld [vmem:[#allocation9 + $0xf0] sm:$0xff]  }
  0x66   :  { %475 = vmatpush1.bf16.msra.mxu0 %v1011_v30  ;;  %516 = vmatpush1.bf16.msra.mxu1 %v1012_v38  ;;  %v135_v10 = vsel %vm134_vm1, %v121_v6, %v133_v9  ;;  %v1042_v2 = vld [vmem:[#allocation9 + $0xa8] sm:$0xff]   ;;  %v1045_v5 = vld [vmem:[#allocation9 + $0x30] sm:$0xff]   ;;  %v1049_v9 = vld [vmem:[#allocation9 + $0x38] sm:$0xff]  }
  0x67   :  { %476 = vmatprep.subr.bf16.mxu0 %v1013_v39  ;;  %517 = vmatprep.subr.bf16.mxu1 %v1015_v40  ;;  %v137_v11 = vsel %vm136_vm2, %v127_v7, %v135_v10  ;;  %v1046_v6 = vld [vmem:[#allocation9 + $0xb0] sm:$0xff]   ;;  %v1047_v7 = vld [vmem:[#allocation9 + $0x78] sm:$0xff]  }
  0x68   :  { %v139_v12 = vadd.f32 %v137_v11, %v103_v8  ;;  %v1048_v8 = vld [vmem:[#allocation9 + $0xf8] sm:$0xff]   ;;  %v292_v11 = vsub.s32 2, %v1284_v35 }
  0x69   :  { %v1050_v10 = vld [vmem:[#allocation9 + $0xb8] sm:$0xff]  }
  0x6a   :  { %477 = vmatpush1.bf16.msra.mxu0 %v1017_v45  ;;  %518 = vmatpush1.bf16.msra.mxu1 %v1018_v46  ;;  %140 = vst [vmem:[#allocation2] sm:$0xf] %v139_v12  ;;  %v1022_v45 = vld [vmem:[#allocation9 + $0x80] sm:$0xff]   ;;  %v180_v12 = vld [vmem:[%s1323_s5] sm:$0xf] }
  0x6b   :  { %914 = vmatprep.subr.bf16.mxu0 %v1019_v54  ;;  %936 = vmatprep.subr.bf16.mxu1 %v1020_v56  ;;  %v1030_v54 = vld [vmem:[#allocation9 + $0x90] sm:$0xff]   ;;  %v1032_v56 = vld [vmem:[#allocation9 + $0xd8] sm:$0xff]  }
  0x71   :  { %v144_v13 = vld [vmem:[#allocation2] sm:$0xf] }
  0x72   :  { %v145_v14 = vmul.f32 0.125, %v144_v13  ;;  %v288_v13 = vsub.s32 1, %v1284_v35 }
  0x74   :  { %v247_v15 = vsel %vm246_vm3, %v145_v14, 0.0 }
  0x75   :  { %v248_v16 = vrot.slane %v247_v15, 4 }
  0x77   :  { %v249_v17 = vadd.f32 %v248_v16, %v247_v15  ;;  %v285_v15 = vrot.slane %v180_v12, %v270_v37  ;;  %v293_v16 = vrot.slane %v180_v12, %v292_v11 }
  0x79   :  { %v250_v18 = vrot.slane %v249_v17, 2 }
  0x7b   :  { %v251_v19 = vadd.f32 %v250_v18, %v249_v17  ;;  %v289_v17 = vrot.slane %v180_v12, %v288_v13 }
  0x7d   :  { %v252_v20 = vrot.slane %v251_v19, 1 }
  0x7f   :  { %v253_v21 = vadd.f32 %v252_v20, %v251_v19 }
  0x81   :  { %v254_v22 = vmul.f32 0.25, %v253_v21 }
  0x83   :  { %v255_v23 = vsub.f32 %v145_v14, %v254_v22  ;;  %v296_v14 = vsub.s32 3, %v1284_v35 }
  0x85   :  { %v256_v24 = vmul.f32 %v255_v23, %v255_v23  ;;  %v297_v18 = vrot.slane %v180_v12, %v296_v14 }
  0x87   :  { %v257_v25 = vsel %vm246_vm3, %v256_v24, 0.0 }
  0x88   :  { %v258_v26 = vrot.slane %v257_v25, 4 }
  0x8a   :  { %v259_v27 = vadd.f32 %v258_v26, %v257_v25 }
  0x8c   :  { %v260_v28 = vrot.slane %v259_v27, 2 }
  0x8e   :  { %v261_v29 = vadd.f32 %v260_v28, %v259_v27 }
  0x90   :  { %v262_v30 = vrot.slane %v261_v29, 1 }
  0x92   :  { %v263_v31 = vadd.f32 %v262_v30, %v261_v29 }
  0x94   :  { %v264_v32 = vmul.f32 0.25, %v263_v31 }
  0x96   :  { %v265_v33 = vadd.f32 1e-05, %v264_v32 }
  0x98   :  { %1051 = vrsqrt.f32 %v265_v33 }
  0xa2   :  { %v1052_v38 = vpop.eup %1051 }
  0xa3   :  { %v267_v39 = vmul.f32 %v1052_v38, %v146_v36 }
  0xa5   :  { %v271_v40 = vrot.slane %v267_v39, %v270_v37 }
  0xa7   :  { %v272_v42 = vmul.f32 %v271_v40, %v255_v23 }
  0xa9   :  { %v279_v43 = vadd.f32 %v848_v41, %v272_v42  ;;  %v881_v41 = vld [vmem:[%s1325_s7] ss:$0 sm:$0xff] }
  0xab   :  { %v280_v46 = vpack.c.bf16 %v279_v43, %v279_v43 }
  0xad   :  { %495 = vmatmul.mubr.bf16.vlgmr.msra.gmra.mrb[0].mxu0 %v280_v46  ;;  %536 = vmatmul.mubr.bf16.vlgmr.msra.gmra.mrb[0].mxu1 %v280_v46 }
  0xae   :  { %915 = vmatpush3.bf16.msra.mxu0 %v1021_v44  ;;  %937 = vmatpush3.bf16.msra.mxu1 %v1022_v45 }
  0xaf   :  { %916 = vmatprep.subr.bf16.mxu0 %v1023_v47  ;;  %938 = vmatprep.subr.bf16.mxu1 %v1024_v48 }
  0xb2   :  { %917 = vmatpush3.bf16.msra.mxu0 %v1025_v49  ;;  %939 = vmatpush3.bf16.msra.mxu1 %v1026_v50 }
  0xb3   :  { %918 = vmatprep.subr.bf16.mxu0 %v1027_v51  ;;  %940 = vmatprep.subr.bf16.mxu1 %v1028_v52 }
  0xb6   :  { %919 = vmatpush3.bf16.msra.mxu0 %v1029_v53  ;;  %941 = vmatpush3.bf16.msra.mxu1 %v1030_v54 }
  0xb7   :  { %920 = vmatprep.subr.bf16.mxu0 %v1031_v55  ;;  %942 = vmatprep.subr.bf16.mxu1 %v1032_v56 }
  0xba   :  { %921 = vmatpush3.bf16.msra.mxu0 %v1033_v57  ;;  %943 = vmatpush3.bf16.msra.mxu1 %v1034_v58 }
  0xbb   :  { %922 = vmatprep.subr.bf16.mxu0 %v1035_v59  ;;  %944 = vmatprep.subr.bf16.mxu1 %v1036_v60 }
  0xbe   :  { %923 = vmatpush3.bf16.msra.mxu0 %v1037_v61  ;;  %945 = vmatpush3.bf16.msra.mxu1 %v1038_v62 }
  0xbf   :  { %924 = vmatprep.subr.bf16.mxu0 %v1039_v63  ;;  %946 = vmatprep.subr.bf16.mxu1 %v1040_v0 }
  0xc2   :  { %925 = vmatpush3.bf16.msra.mxu0 %v1041_v1  ;;  %947 = vmatpush3.bf16.msra.mxu1 %v1042_v2 }
  0xc3   :  { %926 = vmatprep.subr.bf16.mxu0 %v1043_v3  ;;  %948 = vmatprep.subr.bf16.mxu1 %v1044_v4 }
  0xc6   :  { %927 = vmatpush3.bf16.msra.mxu0 %v1045_v5  ;;  %949 = vmatpush3.bf16.msra.mxu1 %v1046_v6 }
  0xc7   :  { %928 = vmatprep.subr.bf16.mxu0 %v1047_v7  ;;  %950 = vmatprep.subr.bf16.mxu1 %v1048_v8 }
  0xca   :  { %929 = vmatpush3.bf16.msra.mxu0 %v1049_v9  ;;  %951 = vmatpush3.bf16.msra.mxu1 %v1050_v10 }
 0x180   :  { %v496_v19 = vpop.f32.mrb[0].mxu0  ;;  %v537_v20 = vpop.f32.mrb[0].mxu1 }
 0x181   :  { %v497_v21 = vadd.f32 %v496_v19, %v285_v15  ;;  %v538_v22 = vadd.f32 %v537_v20, %v293_v16  ;;  %v498_v23 = vpop.f32.mrb[1].mxu0  ;;  %v539_v24 = vpop.f32.mrb[1].mxu1 }
 0x182   :  { %v499_v25 = vadd.f32 %v498_v23, %v289_v17  ;;  %v540_v26 = vadd.f32 %v539_v24, %v297_v18  ;;  %v500_v27 = vpop.f32.mrb[2].mxu0  ;;  %v541_v28 = vpop.f32.mrb[2].mxu1 }
 0x183   :  { %v544_v29 = vmax.f32 %v497_v21, 0.0  ;;  %v546_v30 = vmax.f32 %v538_v22, 0.0  ;;  %v501_v31 = vpop.f32.mrb[3].mxu0  ;;  %v542_v32 = vpop.f32.mrb[3].mxu1 }
 0x184   :  { %v545_v33 = vmax.f32 %v499_v25, 0.0  ;;  %v547_v34 = vmax.f32 %v540_v26, 0.0 }
 0x185   :  { %v550_v35 = vpack.c.bf16 %v546_v30, %v546_v30  ;;  %v548_v38 = vpack.c.bf16 %v544_v29, %v544_v29 }
 0x186   :  { %v549_v36 = vpack.c.bf16 %v545_v33, %v545_v33  ;;  %v551_v37 = vpack.c.bf16 %v547_v34, %v547_v34 }
 0x188   :  { %782 = vmatprep.mubr.bf16.mxu0 %v549_v36  ;;  %822 = vmatprep.mubr.bf16.mxu1 %v551_v37 }
 0x189   :  { %783 = vmatmul.mubr.bf16.vlgmr.msra.gmra.mrb[4].mxu0 %v548_v38  ;;  %823 = vmatmul.mubr.bf16.vlgmr.msra.gmra.mrb[4].mxu1 %v550_v35 }
 0x25c   :  { %v930_v39 = vpop.f32.mrb[4].mxu0  ;;  %v952_v40 = vpop.f32.mrb[4].mxu1 }
 0x25d   :  { %v931_v42 = vpop.f32.mrb[5].mxu0  ;;  %v953_v43 = vpop.f32.mrb[5].mxu1 }
 0x25e   :  { %v932_v44 = vadd.f32 %v931_v42, %v930_v39  ;;  %v954_v45 = vadd.f32 %v953_v43, %v952_v40  ;;  %v933_v46 = vpop.f32.mrb[6].mxu0  ;;  %v955_v47 = vpop.f32.mrb[6].mxu1 }
 0x25f   :  { %v934_v48 = vpop.f32.mrb[7].mxu0  ;;  %v956_v49 = vpop.f32.mrb[7].mxu1 }
 0x260   :  { %v785_v50 = vadd.f32 %v932_v44, %v881_v41 }
 0x262   :  { %v825_v51 = vadd.f32 %v954_v45, %v785_v50 }
 0x264   :  { %830 = vst [vmem:[#allocation11] sm:$0xf] %v825_v51 }
 0x265   :  { %1152 = shalt.err (!%p1149_p8)
}
 0x266   :  { %s1153_s30 = scalar_lea.hbm %s1326_s8, 64 }
 0x267   :  { %p1154_p9 = scmp.ne.s32.totalorder %s1326_s8, %s1153_s30  ;;  %p1157_p10 = scmp.lt.u32.totalorder %s1153_s30, %s1326_s8 }
 0x269   :  { %p1159_p11 = pnand %p1157_p10, %p1154_p9 }
 0x26b   :  { %1162 = shalt.err (!%p1159_p11)
}
 0x26c   :  { %840 = dma.vmem_to_hbm [thread:$0]  %s838_s19, 64, %s1326_s8, [#allocation5]  }
 0x26d   :  { %1169 = dma.done.wait [#allocation5], 64  }
 0x26e   :  { %1170 = vsyncadd [#allocation5], 4294967232 }
 0x26f   :  { %844 = vsyncpa [#allocation4], 1 }
 0x270   :  { %845 = vsyncpa [#allocation7], 1 }
 0x271   :  { %846 = vsyncpa [#allocation10], 1 }
 0x272   :  { %847 = vsyncpa [#allocation5], 1 }

</bundles_post_ra>
